<compile_context>
chip_gen: v6e
topology: v6e:2x2x1
jax: 0.10.0
libtpu: 0.0.40
codegen_flags: <defaults>
</compile_context>

<pallas_src>
import math
import functools

import jax
import jax.numpy as jnp
from jax.experimental import pallas as pl
from jax.experimental.pallas import tpu as pltpu


def _text_embed_kernel(tok_ref, tab_ref, out_ref, *, scale, vocab, groups):
    # tok_ref: (R, G)      int32 -- R = tokens_per_step // G token ids
    # tab_ref: (G*V, G*D)  f32   -- G-way block-diagonal embedding table
    # out_ref: (R, G*D)    f32   -- G scaled embeddings packed per row
    tok = tok_ref[...]                                   # (R, G)
    rows = tok.shape[0]
    cols = tab_ref.shape[0]                              # G * V
    col = jax.lax.broadcasted_iota(jnp.int32, (rows, cols), 1)
    # hit[r, c] == True iff c == j*V + tok[r, j] for some group j.
    hit = col == tok[:, 0:1]
    for j in range(1, groups):
        hit = jnp.logical_or(hit, col == tok[:, j:j + 1] + j * vocab)
    # Fold sqrt(d_model) into the one-hot: each output element is scale * w.
    onehot = jnp.where(hit, scale, 0.0).astype(tab_ref.dtype)
    out_ref[...] = jnp.dot(onehot, tab_ref[...],
                           preferred_element_type=jnp.float32
                           ).astype(out_ref.dtype)


def text_embedding(tokens, emb_table, *, tile_m=None):
    """tokens: (B, L) int32, emb_table: (V, D) float32 -> (B, L, D) float32."""
    B, L = tokens.shape
    V, D = emb_table.shape
    scale = math.sqrt(float(D))

    # Lane-packing factor: pack G = 128 // D embeddings per output row so the
    # output last dim is a full 128 lanes (unmasked stores).  G == 1 falls
    # back to the plain (tile_m, D) layout.
    G = 128 // D if (D < 128 and 128 % D == 0) else 1

    flat = tokens.reshape(B * L).astype(jnp.int32)
    n = flat.shape[0]

    if tile_m is None:
        tile_m = 256 * G                       # 256 matmul rows per grid step
    # Keep tile_m a multiple of 8*G, and do not tile far past the input size.
    tile_m = max(8 * G, (tile_m // (8 * G)) * (8 * G))
    tile_m = min(tile_m, pl.cdiv(n, 8 * G) * (8 * G))

    n_pad = pl.cdiv(n, tile_m) * tile_m
    if n_pad != n:
        flat = jnp.pad(flat, (0, n_pad - n))   # pad with padding_idx = 0
    tok2d = flat.reshape(n_pad // G, G)

    # Block-diagonal table: block j maps tokens of group j (ids offset by j*V)
    # to output lanes [j*D, (j+1)*D).  For G == 1 this is the original table.
    if G == 1:
        table = emb_table
    else:
        table = jnp.zeros((G * V, G * D), emb_table.dtype)
        for j in range(G):
            table = table.at[j * V:(j + 1) * V, j * D:(j + 1) * D].set(emb_table)

    R = tile_m // G
    kernel = functools.partial(_text_embed_kernel,
                               scale=scale, vocab=V, groups=G)

    out = pl.pallas_call(
        kernel,
        out_shape=jax.ShapeDtypeStruct((n_pad // G, G * D), emb_table.dtype),
        grid_spec=pltpu.PrefetchScalarGridSpec(
            num_scalar_prefetch=0,
            grid=(n_pad // tile_m,),
            in_specs=[
                pl.BlockSpec((R, G), lambda i: (i, 0)),          # token tile
                pl.BlockSpec((G * V, G * D), lambda i: (0, 0)),  # full table
            ],
            out_specs=pl.BlockSpec((R, G * D), lambda i: (i, 0)),
        ),
        compiler_params=pltpu.CompilerParams(
            dimension_semantics=("parallel",),
            vmem_limit_bytes=64 * 1024 * 1024,
        ),
    )(tok2d, table)

    # (n_pad//G, G*D) row-major is byte-identical to (n_pad, D) row-major.
    return out.reshape(n_pad, D)[:n].reshape(B, L, D)


if __name__ == "__main__":
    # Module config: text_vocab with 15 entries -> embedding has 16 rows.
    d_model = 32
    vocab_len = 15
    V = vocab_len + 1          # len(text_vocab) + 1
    B, L = 2, 8

    key = jax.random.PRNGKey(0)
    k_emb, k_tok = jax.random.split(key)

    # nn.Embedding default init: N(0, 1); padding_idx=0 row is zeroed.
    emb_table = jax.random.normal(k_emb, (V, d_model), dtype=jnp.float32)
    emb_table = emb_table.at[0].set(0.0)

    # tokens in [0, V-1]; position 0 plays the role of the [INT]/pad token.
    tokens = jax.random.randint(k_tok, (B, L), minval=0, maxval=V,
                                dtype=jnp.int32)

    out = jax.block_until_ready(text_embedding(tokens, emb_table))

    # Pure-JAX reference of the PyTorch forward.
    ref = jnp.take(emb_table, tokens, axis=0) * math.sqrt(float(d_model))

    assert out.shape == (B, L, d_model)
    assert jnp.allclose(out, ref, atol=1e-4, rtol=1e-5), \
        float(jnp.max(jnp.abs(out - ref)))
    print("KERNEL_OK")
</pallas_src>

<mosaic_0001>
module attributes {stable_mosaic.version = 11 : i64} {
  func.func @_text_embed_kernel(%arg0: i32, %arg1: memref<8x4xi32, #tpu.memory_space<vmem>>, %arg2: memref<64x128xf32, #tpu.memory_space<vmem>>, %arg3: memref<8x128xf32, #tpu.memory_space<vmem>>) attributes {dimension_semantics = [#tpu.dimension_semantics<parallel>], iteration_bounds = array<i64: 1>, scalar_prefetch = 0 : i64, scratch_operands = 0 : i64, tpu.core_type = #tpu.core_type<tc>, window_params = [{transform_indices = @transform_0, window_bounds = array<i64: 8, 4>}, {pipeline_mode = #tpu.pipeline_mode<synchronous>, transform_indices = @transform_1, window_bounds = array<i64: 64, 128>}, {transform_indices = @transform_2, window_bounds = array<i64: 8, 128>}]} {
    %c0 = arith.constant 0 : index
    %c0_0 = arith.constant 0 : index
    %0 = vector.load %arg1[%c0, %c0_0] : memref<8x4xi32, #tpu.memory_space<vmem>>, vector<8x4xi32>
    %1 = tpu.iota {dimensions = array<i32: 1>} : vector<8x64xi32>
    %2 = vector.extract_strided_slice %0 {offsets = [0, 0], sizes = [8, 1], strides = [1, 1]} : vector<8x4xi32> to vector<8x1xi32>
    %3 = vector.broadcast %2 : vector<8x1xi32> to vector<8x64xi32>
    %4 = arith.cmpi eq, %1, %3 : vector<8x64xi32>
    %5 = vector.extract_strided_slice %0 {offsets = [0, 1], sizes = [8, 1], strides = [1, 1]} : vector<8x4xi32> to vector<8x1xi32>
    %c16_i32 = arith.constant 16 : i32
    %6 = vector.broadcast %c16_i32 : i32 to vector<8x1xi32>
    %7 = arith.addi %5, %6 : vector<8x1xi32>
    %8 = vector.broadcast %7 : vector<8x1xi32> to vector<8x64xi32>
    %9 = arith.cmpi eq, %1, %8 : vector<8x64xi32>
    %10 = arith.ori %4, %9 : vector<8x64xi1>
    %11 = vector.extract_strided_slice %0 {offsets = [0, 2], sizes = [8, 1], strides = [1, 1]} : vector<8x4xi32> to vector<8x1xi32>
    %c32_i32 = arith.constant 32 : i32
    %12 = vector.broadcast %c32_i32 : i32 to vector<8x1xi32>
    %13 = arith.addi %11, %12 : vector<8x1xi32>
    %14 = vector.broadcast %13 : vector<8x1xi32> to vector<8x64xi32>
    %15 = arith.cmpi eq, %1, %14 : vector<8x64xi32>
    %16 = arith.ori %10, %15 : vector<8x64xi1>
    %17 = vector.extract_strided_slice %0 {offsets = [0, 3], sizes = [8, 1], strides = [1, 1]} : vector<8x4xi32> to vector<8x1xi32>
    %c48_i32 = arith.constant 48 : i32
    %18 = vector.broadcast %c48_i32 : i32 to vector<8x1xi32>
    %19 = arith.addi %17, %18 : vector<8x1xi32>
    %20 = vector.broadcast %19 : vector<8x1xi32> to vector<8x64xi32>
    %21 = arith.cmpi eq, %1, %20 : vector<8x64xi32>
    %22 = arith.ori %16, %21 : vector<8x64xi1>
    %cst = arith.constant 5.65685415 : f32
    %cst_1 = arith.constant 0.000000e+00 : f32
    %23 = vector.broadcast %cst : f32 to vector<8x64xf32>
    %24 = vector.broadcast %cst_1 : f32 to vector<8x64xf32>
    %25 = arith.select %22, %23, %24 : vector<8x64xi1>, vector<8x64xf32>
    %c0_2 = arith.constant 0 : index
    %c0_3 = arith.constant 0 : index
    %26 = vector.load %arg2[%c0_2, %c0_3] : memref<64x128xf32, #tpu.memory_space<vmem>>, vector<64x128xf32>
    %cst_4 = arith.constant dense<0.000000e+00> : vector<8x128xf32>
    %27 = tpu.matmul %25, %26, %cst_4 {dimension_numbers = #tpu.dot_dimension_numbers<[1], [0], [0], [1], [0, 0, 1, 1], [], []>} : vector<8x64xf32>, vector<64x128xf32>, vector<8x128xf32> -> vector<8x128xf32>
    %c0_5 = arith.constant 0 : index
    %c0_6 = arith.constant 0 : index
    %28 = vector.load %arg3[%c0_5, %c0_6] : memref<8x128xf32, #tpu.memory_space<vmem>>, vector<8x128xf32>
    tpu.vector_store %arg3[%c0_5, %c0_6], %27 {strides = array<i32>} : memref<8x128xf32, #tpu.memory_space<vmem>>, vector<8x128xf32>,
    return
  }
  func.func @transform_0(%arg0: i32) -> (i32, i32) {
    %c0_i32 = arith.constant 0 : i32
    %c0_i32_0 = arith.constant 0 : i32
    return %arg0, %c0_i32 : i32, i32
  }
  func.func @transform_1(%arg0: i32) -> (i32, i32) {
    %c0_i32 = arith.constant 0 : i32
    %c0_i32_0 = arith.constant 0 : i32
    %c0_i32_1 = arith.constant 0 : i32
    return %c0_i32, %c0_i32_0 : i32, i32
  }
  func.func @transform_2(%arg0: i32) -> (i32, i32) {
    %c0_i32 = arith.constant 0 : i32
    %c0_i32_0 = arith.constant 0 : i32
    return %arg0, %c0_i32 : i32, i32
  }
}

</mosaic_0001>

<bundles_post_ra>
// kernel: tpu_custom_call.1
= control target key start
LH: loop header
LB: loop body
LE: loop exit
PB: predicated region body
PF: predicated region fallthrough
CT: control target
= control target key end

     0   :  { %7 = vsyncpa [#allocation3], 0  ;;  %s272_s0 = inlined_call_operand.vmem [shape: s32[8,4], index: 0, kind: input, shape index: {}]   ;;  %s273_s1 = inlined_call_operand.hbm [shape: f32[64,128], index: 1, kind: input, shape index: {}]   ;;  %s274_s2 = inlined_call_operand.hbm [shape: f32[8,128], index: 2, kind: output, shape index: {}]  }
   0x1   :  { %8 = vsyncpa [#allocation4], 0  ;;  %s238_s9 = smov [#allocation2]  }
   0x2   :  { %s16_s10 = sshll.u32 %s238_s9, 4  ;;  %s17_s10 = int_to_ptr.vmem [resolvable:$true] %s16_s10 }
   0x3   :  { %s202_s11 = scalar_lea.vmem %s17_s10, 1024  ;;  %p207_p1 = scmp.lt.s32.totalorder %s17_s10, %s17_s10 }
   0x4   :  { %p203_p0 = scmp.ne.s32.totalorder %s17_s10, %s202_s11  ;;  %p208_p2 = scmp.lt.s32.totalorder %s202_s11, %s202_s11 }
   0x6   :  { %p209_p3 = por %p208_p2, %p207_p1 }
   0x8   :  { %p210_p4 = pnand %p209_p3, %p203_p0 }
   0xa   :  { %213 = shalt.err (!%p210_p4)
}
   0xb   :  { %s239_s12 = smov 128   ;;  %s240_s13 = smov 8  }
   0xc   :  { %22 = dma.hbm_to_vmem [thread:$0]  %s273_s1, 1024, %s17_s10, [#allocation3], %s239_s12, %s239_s12, %s240_s13  }
   0xd   :  { %234 = dma.done.wait [#allocation3], 1024  }
   0xe   :  { %235 = vsyncadd [#allocation3], 4294966272  ;;  %v241_v0 = vmov 0   ;;  %v242_v1 = vmov 2   ;;  %v243_v2 = vmov 0.0   ;;  %v26_v3 = vld [vmem:[%s272_s0] sm:$0xff]  ;;  %v27_v17 = vlaneseq }
   0xf   :  { %189 = vset.pattern.permute.xlu0 %v241_v0  ;;  %191 = vset.pattern.permute.xlu1 %v242_v1  ;;  %v59_v4 = vld [vmem:[#allocation2 + $0x38] sm:$0xff]  ;;  %v58_v5 = vld [vmem:[#allocation2 + $0x30] sm:$0xff]  ;;  %v39_v6 = vadd.s32 32, %v26_v3  ;;  %v33_v7 = vadd.s32 16, %v26_v3  ;;  %v57_v8 = vld [vmem:[#allocation2 + $0x28] sm:$0xff]  ;;  %v45_v9 = vadd.s32 48, %v26_v3 }
  0x10   :  { %160 = vmatprep.subr.mxu0 %v243_v2  ;;  %30 = vperm.xlu0 %189, %v26_v3   ;;  %v56_v10 = vld [vmem:[#allocation2 + $0x20] sm:$0xff]  ;;  %v244_v11 = vmov 1   ;;  %v55_v12 = vld [vmem:[#allocation2 + $0x18] sm:$0xff]  ;;  %v245_v13 = vmov 3   ;;  %v54_v14 = vld [vmem:[#allocation2 + $0x10] sm:$0xff]  ;;  %vm246_vm0 = vmmov 0  }
  0x11   :  { %161 = vmatpush3.msra.mxu0 %v59_v4  ;;  %41 = vperm.xlu1 %191, %v39_v6   ;;  %v53_v15 = vld [vmem:[#allocation2 + $0x8] sm:$0xff]  ;;  %v52_v16 = vld [vmem:[#allocation2] sm:$0xff]  ;;  %v28_v19 = vand.u32 127, %v27_v17  ;;  %vm60_vm7 = vcmask 523264   ;;  %s247_s0 = smov [#allocation5]  }
  0x12   :  { %162 = vmatprep.subr.mxu0 %v243_v2  ;;  %176 = vmatprep.mubr.msk.f32.mxu0 %vm246_vm0, %v243_v2  ;;  %s141_s1 = sshll.u32 %s247_s0, 4  ;;  %s142_s1 = int_to_ptr.vmem [resolvable:$true] %s141_s1 }
  0x13   :  { %163 = vmatpush3.msra.mxu0 %v58_v5  ;;  %s214_s18 = scalar_lea.vmem %s142_s1, 128  ;;  %p219_p6 = scmp.lt.s32.totalorder %s142_s1, %s142_s1 }
  0x14   :  { %164 = vmatprep.subr.mxu0 %v243_v2  ;;  %190 = vset.pattern.permute.xlu0 %v244_v11  ;;  %p215_p5 = scmp.ne.s32.totalorder %s142_s1, %s214_s18  ;;  %p220_p7 = scmp.lt.s32.totalorder %s214_s18, %s214_s18 }
  0x15   :  { %165 = vmatpush3.msra.mxu0 %v57_v8  ;;  %35 = vperm.xlu0 %190, %v33_v7  }
  0x16   :  { %166 = vmatprep.subr.mxu0 %v243_v2  ;;  %192 = vset.pattern.permute.xlu1 %v245_v13  ;;  %p221_p8 = por %p220_p7, %p219_p6 }
  0x17   :  { %167 = vmatpush3.msra.mxu0 %v56_v10  ;;  %47 = vperm.xlu1 %192, %v45_v9  }
  0x18   :  { %168 = vmatprep.subr.mxu0 %v243_v2  ;;  %p222_p9 = pnand %p221_p8, %p215_p5 }
  0x19   :  { %169 = vmatpush3.msra.mxu0 %v55_v12  ;;  %193 = vset.pattern.permute.xlu0 %v245_v13 }
  0x1a   :  { %170 = vmatprep.subr.mxu0 %v243_v2 }
  0x1b   :  { %171 = vmatpush3.msra.mxu0 %v54_v14 }
  0x1c   :  { %172 = vmatprep.subr.mxu0 %v243_v2 }
  0x1d   :  { %173 = vmatpush3.msra.mxu0 %v53_v15 }
  0x1e   :  { %174 = vmatprep.subr.mxu0 %v243_v2 }
  0x1f   :  { %175 = vmatpush3.msra.mxu0 %v52_v16 }
  0x8b   :  { %v31_v18 = vpop.permute.xlu0 %30 }
  0x8c   :  { %v42_v20 = vpop.permute.xlu1 %41  ;;  %vm32_vm1 = vcmp.eq.s32.totalorder %v28_v19, %v31_v18 }
  0x8d   :  { %vm43_vm3 = vcmp.eq.s32.totalorder %v28_v19, %v42_v20 }
  0x90   :  { %v36_v21 = vpop.permute.xlu0 %35 }
  0x91   :  { %vm37_vm2 = vcmp.eq.s32.totalorder %v28_v19, %v36_v21 }
  0x92   :  { %vm38_vm4 = vmor %vm32_vm1, %vm37_vm2  ;;  %v48_v22 = vpop.permute.xlu1 %47 }
  0x93   :  { %vm44_vm5 = vmor %vm38_vm4, %vm43_vm3  ;;  %vm49_vm6 = vcmp.eq.s32.totalorder %v28_v19, %v48_v22 }
  0x94   :  { %vm50_vm8 = vmor %vm44_vm5, %vm49_vm6 }
  0x95   :  { %v51_v23 = vsel %vm50_vm8, 5.656854, %v243_v2 }
  0x96   :  { %177 = vmatmul.mubr.msk.f32.vlgmr.msra.gmra.mxu0 %vm60_vm7, %v51_v23 }
 0x156   :  { %v130_v24 = vpop.f32.mrf.mxu0 }
 0x157   :  { %134 = vst [vmem:[#allocation5] sm:$0xff] %v130_v24 }
 0x158   :  { %v178_v25 = vpop.f32.mrf.mxu0 }
 0x159   :  { %225 = shalt.err (!%p222_p9)
}
 0x15a   :  { %144 = dma.vmem_to_hbm [thread:$0]  %s142_s1, 128, %s274_s2, [#allocation4]  }
 0x15b   :  { %236 = dma.done.wait [#allocation4], 128  }
 0x15c   :  { %237 = vsyncadd [#allocation4], 4294967168 }
 0x15d   :  { %148 = vsyncpa [#allocation3], 1 }
 0x15e   :  { %149 = vsyncpa [#allocation4], 1 }

</bundles_post_ra>
